<compile_context>
chip_gen: v7x
topology: tpu7x:2x2x1
jax: 0.10.0
libtpu: 0.0.40
codegen_flags: <defaults>
</compile_context>

<pallas_src>
import functools

import jax
import jax.numpy as jnp
from jax.experimental import pallas as pl
from jax.experimental.pallas import tpu as pltpu

# Synthetic config (stands in for MODEL_CONFIG['gnn_encoder']['output_dim'])
EMBED_DIM = 256
H1 = 128
H2 = 64


def _round_up(x, m):
    return ((x + m - 1) // m) * m


def _vmem_limit_bytes(tb, d, x_itemsize):
    """Conservative VMEM budget: double-buffered I/O + resident weights + temporaries."""
    x_bufs = 2 * tb * d * x_itemsize                    # double-buffered x tiles
    y_bufs = 2 * tb * 4                                 # double-buffered y tiles
    o_bufs = 2 * tb * 4                                 # double-buffered sq output tiles
    weights = (d * H1 + H1 * H2) * 2 + (H1 + 2 * H2 + 1) * 4
    # bf16 x copy, h1 (f32+bf16), h2 (f32) + broadcast product, lane-dense epilogue f32s
    inter = tb * (d * 2 + H1 * 6 + H2 * 8 + 4 * 4)
    est = x_bufs + y_bufs + o_bufs + weights + inter
    return int(min(max(1.5 * est + (2 << 20), 16 << 20), 48 << 20))


def _mlp_mse_kernel(x_ref, w1_ref, b1_ref, w2_ref, b2_ref, w3_ref, b3_ref,
                    y_ref, out_ref, *, tb, batch):
    """One batch tile: fused 3-layer MLP + per-tile lane-dense squared errors."""
    i = pl.program_id(0)
    g = tb // 128

    # x arrives in f32 (one HBM pass); cast on the VPU for the MXU.
    x = x_ref[...].astype(jnp.bfloat16)                          # [tb, D]

    # Linear(D,128) + ReLU   (MXU, bf16 operands, f32 accumulation)
    h1 = jnp.dot(x, w1_ref[...],
                 preferred_element_type=jnp.float32) + b1_ref[...]
    h1 = jnp.maximum(h1, 0.0)                                    # [tb, 128] f32

    # Linear(128,64) + ReLU
    h2 = jnp.dot(h1.astype(jnp.bfloat16), w2_ref[...],
                 preferred_element_type=jnp.float32) + b2_ref[...]
    h2 = jnp.maximum(h2, 0.0)                                    # [tb, 64] f32

    # Linear(64,1) + Sigmoid, computed lane-dense: split the sublane axis
    # (free re-indexing), then lane-reduce over the 64 features.
    h2r = h2.reshape(g, 128, H2)
    w3 = w3_ref[...].reshape(1, 1, H2)
    logits = jnp.sum(h2r * w3, axis=-1) + b3_ref[...]            # (g,128) + (1,1)
    pred = jax.nn.sigmoid(logits)                                # [g, 128] f32

    diff = pred - y_ref[0]                                       # [g, 128]
    sq = diff * diff
    out_ref[...] = sq.reshape(1, g, 128)

    # Only the last tile can be partial; mask its padded rows there only.
    if batch % tb != 0:
        @pl.when(i == pl.num_programs(0) - 1)
        def _():
            row = (i * tb
                   + jax.lax.broadcasted_iota(jnp.int32, (g, 128), 0) * 128
                   + jax.lax.broadcasted_iota(jnp.int32, (g, 128), 1))
            # select (not multiply-by-mask) so NaN/Inf in pad rows never propagate
            out_ref[...] = jnp.where(row < batch, sq, 0.0).reshape(1, g, 128)


def metric_prediction_loss(embeddings, performance, params, *, block_rows=2048):
    """embeddings: [B, D] f32; performance: [B] f32; params: dict of MLP weights."""
    B, D = embeddings.shape

    # Batch tile: multiple of 128 (lane-dense epilogue + bf16 sublane rules).
    tb = max(128, min(_round_up(block_rows, 128), _round_up(B, 128)))
    g = tb // 128
    n_tiles = pl.cdiv(B, tb)

    # Tiny per-call weight casts (bf16 MXU operands for W1/W2, f32 elsewhere).
    # TODO(synk): hoist these casts out of the call if invoked repeatedly.
    w1 = params["w1"].astype(jnp.bfloat16)
    w2 = params["w2"].astype(jnp.bfloat16)
    w3 = params["w3"].reshape(1, H2).astype(jnp.float32)
    b1 = params["b1"].reshape(1, H1).astype(jnp.float32)
    b2 = params["b2"].reshape(1, H2).astype(jnp.float32)
    b3 = params["b3"].reshape(1, 1).astype(jnp.float32)

    # Lane-dense target layout: (n_tiles, tb//128, 128).  Padding y is B floats
    # (negligible); embeddings are NOT padded — Pallas handles the partial last
    # x tile and the kernel masks its padded rows.
    pad = n_tiles * tb - B
    y = performance.astype(jnp.float32)
    if pad:
        y = jnp.pad(y, (0, pad))
    y = y.reshape(n_tiles, g, 128)

    const = lambda shape: pl.BlockSpec(shape, lambda i, _s=shape: tuple(0 for _ in _s))
    kernel = functools.partial(_mlp_mse_kernel, tb=tb, batch=B)

    partial_sq = pl.pallas_call(
        kernel,
        out_shape=jax.ShapeDtypeStruct((n_tiles, g, 128), jnp.float32),
        grid=(n_tiles,),
        in_specs=[
            pl.BlockSpec((tb, D), lambda i: (i, 0)),            # x tile (pipelined, f32)
            const((D, H1)), const((1, H1)),                     # W1, b1 (VMEM-resident)
            const((H1, H2)), const((1, H2)),                    # W2, b2 (VMEM-resident)
            const((1, H2)), const((1, 1)),                      # w3 row, b3 (resident)
            pl.BlockSpec((1, g, 128), lambda i: (i, 0, 0)),     # y tile (lane-dense)
        ],
        out_specs=pl.BlockSpec((1, g, 128), lambda i: (i, 0, 0)),
        compiler_params=pltpu.CompilerParams(
            dimension_semantics=("parallel",),
            vmem_limit_bytes=_vmem_limit_bytes(tb, D, embeddings.dtype.itemsize),
        ),
    )(embeddings, w1, b1, w2, b2, w3, b3, y)

    # Finish the mean in the wrapper (tiny XLA reduce: one f32 per row).
    return jnp.sum(partial_sq) / jnp.float32(B)


def init_params(key, dim=EMBED_DIM):
    """Deterministic init mimicking PyTorch nn.Linear default (U[-1/sqrt(fan_in), +])."""
    ks = jax.random.split(key, 6)

    def lin(kw, kb, fan_in, fan_out):
        bound = 1.0 / jnp.sqrt(fan_in)
        w = jax.random.uniform(kw, (fan_in, fan_out), jnp.float32, -bound, bound)
        b = jax.random.uniform(kb, (1, fan_out), jnp.float32, -bound, bound)
        return w, b

    w1, b1 = lin(ks[0], ks[1], dim, H1)
    w2, b2 = lin(ks[2], ks[3], H1, H2)
    w3, b3 = lin(ks[4], ks[5], H2, 1)
    return {"w1": w1, "b1": b1, "w2": w2, "b2": b2, "w3": w3, "b3": b3}


def _ref_loss(x, y, p):
    """Plain-JAX reference with the same bf16-operand / f32-accumulate math."""
    xb = x.astype(jnp.bfloat16)
    w1 = p["w1"].astype(jnp.bfloat16)
    w2 = p["w2"].astype(jnp.bfloat16)
    h1 = jnp.maximum(
        jnp.dot(xb, w1, preferred_element_type=jnp.float32) + p["b1"], 0.0)
    h2 = jnp.maximum(
        jnp.dot(h1.astype(jnp.bfloat16), w2,
                preferred_element_type=jnp.float32) + p["b2"], 0.0)
    logits = jnp.sum(h2 * p["w3"].reshape(1, H2), axis=-1) + p["b3"].reshape(())
    pred = jax.nn.sigmoid(logits)
    return jnp.mean((pred - y) ** 2)


if __name__ == "__main__":
    key = jax.random.PRNGKey(0)
    k_emb, k_perf, k_par = jax.random.split(key, 3)
    params = init_params(k_par)

    # Case 1: small batch -> single (padded) tile, heavy masking.
    B = 8
    emb = jax.random.normal(k_emb, (B, EMBED_DIM), jnp.float32)
    perf = jax.random.uniform(k_perf, (B,), jnp.float32)
    loss = metric_prediction_loss(emb, perf, params)
    jax.block_until_ready(loss)
    ref = _ref_loss(emb, perf, params)
    assert jnp.allclose(loss, ref, atol=3e-5, rtol=3e-3), (loss, ref)

    # Case 2: multi-tile with a partial last tile (parallel grid + last-tile mask).
    B2 = 300
    emb2 = jax.random.normal(jax.random.fold_in(k_emb, 1), (B2, EMBED_DIM),
                             jnp.float32)
    perf2 = jax.random.uniform(jax.random.fold_in(k_perf, 1), (B2,), jnp.float32)
    loss2 = metric_prediction_loss(emb2, perf2, params, block_rows=128)
    jax.block_until_ready(loss2)
    ref2 = _ref_loss(emb2, perf2, params)
    assert jnp.allclose(loss2, ref2, atol=3e-5, rtol=3e-3), (loss2, ref2)

    # Case 3: exactly tile-divisible batch (no-mask fast path).
    B3 = 256
    emb3 = jax.random.normal(jax.random.fold_in(k_emb, 2), (B3, EMBED_DIM),
                             jnp.float32)
    perf3 = jax.random.uniform(jax.random.fold_in(k_perf, 2), (B3,), jnp.float32)
    loss3 = metric_prediction_loss(emb3, perf3, params, block_rows=128)
    jax.block_until_ready(loss3)
    ref3 = _ref_loss(emb3, perf3, params)
    assert jnp.allclose(loss3, ref3, atol=3e-5, rtol=3e-3), (loss3, ref3)

    print("KERNEL_OK")
</pallas_src>

<mosaic_0001>
module attributes {stable_mosaic.version = 11 : i64} {
  func.func @_mlp_mse_kernel(%arg0: i32, %arg1: memref<128x256xf32, #tpu.memory_space<vmem>>, %arg2: memref<256x128xbf16, #tpu.memory_space<vmem>>, %arg3: memref<1x128xf32, #tpu.memory_space<vmem>>, %arg4: memref<128x64xbf16, #tpu.memory_space<vmem>>, %arg5: memref<1x64xf32, #tpu.memory_space<vmem>>, %arg6: memref<1x64xf32, #tpu.memory_space<vmem>>, %arg7: memref<1x1xf32, #tpu.memory_space<vmem>>, %arg8: memref<1x1x128xf32, #tpu.memory_space<vmem>>, %arg9: memref<1x1x128xf32, #tpu.memory_space<vmem>>) attributes {dimension_semantics = [#tpu.dimension_semantics<parallel>], iteration_bounds = array<i64: 1>, scalar_prefetch = 0 : i64, scratch_operands = 0 : i64, tpu.core_type = #tpu.core_type<tc>, window_params = [{transform_indices = @transform_0, window_bounds = array<i64: 128, 256>}, {pipeline_mode = #tpu.pipeline_mode<synchronous>, transform_indices = @transform_1, window_bounds = array<i64: 256, 128>}, {pipeline_mode = #tpu.pipeline_mode<synchronous>, transform_indices = @transform_2, window_bounds = array<i64: 1, 128>}, {pipeline_mode = #tpu.pipeline_mode<synchronous>, transform_indices = @transform_3, window_bounds = array<i64: 128, 64>}, {pipeline_mode = #tpu.pipeline_mode<synchronous>, transform_indices = @transform_4, window_bounds = array<i64: 1, 64>}, {pipeline_mode = #tpu.pipeline_mode<synchronous>, transform_indices = @transform_5, window_bounds = array<i64: 1, 64>}, {pipeline_mode = #tpu.pipeline_mode<synchronous>, transform_indices = @transform_6, window_bounds = array<i64: 1, 1>}, {transform_indices = @transform_7, window_bounds = array<i64: 1, 1, 128>}, {transform_indices = @transform_8, window_bounds = array<i64: 1, 1, 128>}]} {
    %c0 = arith.constant 0 : index
    %c0_0 = arith.constant 0 : index
    %0 = vector.load %arg1[%c0, %c0_0] : memref<128x256xf32, #tpu.memory_space<vmem>>, vector<128x256xf32>
    %1 = arith.truncf %0 : vector<128x256xf32> to vector<128x256xbf16>
    %c0_1 = arith.constant 0 : index
    %c0_2 = arith.constant 0 : index
    %2 = vector.load %arg2[%c0_1, %c0_2] : memref<256x128xbf16, #tpu.memory_space<vmem>>, vector<256x128xbf16>
    %cst = arith.constant dense<0.000000e+00> : vector<128x128xf32>
    %3 = tpu.matmul %1, %2, %cst {dimension_numbers = #tpu.dot_dimension_numbers<[1], [0], [0], [1], [0, 0, 1, 1], [], []>} : vector<128x256xbf16>, vector<256x128xbf16>, vector<128x128xf32> -> vector<128x128xf32>
    %c0_3 = arith.constant 0 : index
    %c0_4 = arith.constant 0 : index
    %4 = vector.load %arg3[%c0_3, %c0_4] : memref<1x128xf32, #tpu.memory_space<vmem>>, vector<1x128xf32>
    %5 = vector.broadcast %4 : vector<1x128xf32> to vector<128x128xf32>
    %6 = arith.addf %3, %5 : vector<128x128xf32>
    %cst_5 = arith.constant 0.000000e+00 : f32
    %7 = vector.broadcast %cst_5 : f32 to vector<128x128xf32>
    %8 = arith.maximumf %6, %7 : vector<128x128xf32>
    %9 = arith.truncf %8 : vector<128x128xf32> to vector<128x128xbf16>
    %c0_6 = arith.constant 0 : index
    %c0_7 = arith.constant 0 : index
    %10 = vector.load %arg4[%c0_6, %c0_7] : memref<128x64xbf16, #tpu.memory_space<vmem>>, vector<128x64xbf16>
    %cst_8 = arith.constant dense<0.000000e+00> : vector<128x64xf32>
    %11 = tpu.matmul %9, %10, %cst_8 {dimension_numbers = #tpu.dot_dimension_numbers<[1], [0], [0], [1], [0, 0, 1, 1], [], []>} : vector<128x128xbf16>, vector<128x64xbf16>, vector<128x64xf32> -> vector<128x64xf32>
    %c0_9 = arith.constant 0 : index
    %c0_10 = arith.constant 0 : index
    %12 = vector.load %arg5[%c0_9, %c0_10] : memref<1x64xf32, #tpu.memory_space<vmem>>, vector<1x64xf32>
    %13 = vector.broadcast %12 : vector<1x64xf32> to vector<128x64xf32>
    %14 = arith.addf %11, %13 : vector<128x64xf32>
    %cst_11 = arith.constant 0.000000e+00 : f32
    %15 = vector.broadcast %cst_11 : f32 to vector<128x64xf32>
    %16 = arith.maximumf %14, %15 : vector<128x64xf32>
    %17 = vector.shape_cast %16 : vector<128x64xf32> to vector<1x128x64xf32>
    %c0_12 = arith.constant 0 : index
    %c0_13 = arith.constant 0 : index
    %18 = vector.load %arg6[%c0_12, %c0_13] : memref<1x64xf32, #tpu.memory_space<vmem>>, vector<1x64xf32>
    %19 = vector.shape_cast %18 : vector<1x64xf32> to vector<1x1x64xf32>
    %20 = vector.broadcast %19 : vector<1x1x64xf32> to vector<1x128x64xf32>
    %21 = arith.mulf %17, %20 : vector<1x128x64xf32>
    %cst_14 = arith.constant dense<0.000000e+00> : vector<1x128xf32>
    %22 = vector.multi_reduction <add>, %21, %cst_14 [2] : vector<1x128x64xf32> to vector<1x128xf32>
    %c0_15 = arith.constant 0 : index
    %c0_16 = arith.constant 0 : index
    %23 = vector.load %arg7[%c0_15, %c0_16] : memref<1x1xf32, #tpu.memory_space<vmem>>, vector<1x1xf32>
    %24 = vector.broadcast %23 : vector<1x1xf32> to vector<1x128xf32>
    %25 = arith.addf %22, %24 : vector<1x128xf32>
    %26 = arith.negf %25 : vector<1x128xf32>
    %27 = math.exp %26 : vector<1x128xf32>
    %cst_17 = arith.constant 1.000000e+00 : f32
    %28 = vector.broadcast %cst_17 : f32 to vector<1x128xf32>
    %29 = arith.addf %28, %27 : vector<1x128xf32>
    %30 = arith.divf %28, %29 : vector<1x128xf32>
    %c0_18 = arith.constant 0 : index
    %c0_19 = arith.constant 0 : index
    %c0_20 = arith.constant 0 : index
    %31 = vector.load %arg8[%c0_18, %c0_19, %c0_20] : memref<1x1x128xf32, #tpu.memory_space<vmem>>, vector<1x1x128xf32>
    %32 = vector.shape_cast %31 : vector<1x1x128xf32> to vector<1x128xf32>
    %33 = arith.subf %30, %32 : vector<1x128xf32>
    %34 = arith.mulf %33, %33 : vector<1x128xf32>
    %35 = vector.shape_cast %34 : vector<1x128xf32> to vector<1x1x128xf32>
    %c0_21 = arith.constant 0 : index
    %c0_22 = arith.constant 0 : index
    %c0_23 = arith.constant 0 : index
    %36 = vector.load %arg9[%c0_21, %c0_22, %c0_23] : memref<1x1x128xf32, #tpu.memory_space<vmem>>, vector<1x1x128xf32>
    tpu.vector_store %arg9[%c0_21, %c0_22, %c0_23], %35 {strides = array<i32>} : memref<1x1x128xf32, #tpu.memory_space<vmem>>, vector<1x1x128xf32>,
    %c0_i32 = arith.constant 0 : i32
    %37 = arith.cmpi eq, %arg0, %c0_i32 : i32
    %38 = arith.extui %37 : i1 to i32
    %c0_i32_24 = arith.constant 0 : i32
    %39 = arith.cmpi ne, %38, %c0_i32_24 : i32
    scf.if %39 {
      %c128_i32 = arith.constant 128 : i32
      %40 = arith.muli %arg0, %c128_i32 : i32
      %41 = tpu.iota {dimensions = array<i32: 0>} : vector<1x128xi32>
      %c128_i32_25 = arith.constant 128 : i32
      %42 = vector.broadcast %c128_i32_25 : i32 to vector<1x128xi32>
      %43 = arith.muli %41, %42 : vector<1x128xi32>
      %44 = vector.broadcast %40 : i32 to vector<1x128xi32>
      %45 = arith.addi %44, %43 : vector<1x128xi32>
      %46 = tpu.iota {dimensions = array<i32: 1>} : vector<1x128xi32>
      %47 = arith.addi %45, %46 : vector<1x128xi32>
      %c8_i32 = arith.constant 8 : i32
      %48 = vector.broadcast %c8_i32 : i32 to vector<1x128xi32>
      %49 = arith.cmpi slt, %47, %48 : vector<1x128xi32>
      %cst_26 = arith.constant 0.000000e+00 : f32
      %50 = vector.broadcast %cst_26 : f32 to vector<1x128xf32>
      %51 = arith.select %49, %34, %50 : vector<1x128xi1>, vector<1x128xf32>
      %52 = vector.shape_cast %51 : vector<1x128xf32> to vector<1x1x128xf32>
      %c0_27 = arith.constant 0 : index
      %c0_28 = arith.constant 0 : index
      %c0_29 = arith.constant 0 : index
      %53 = vector.load %arg9[%c0_27, %c0_28, %c0_29] : memref<1x1x128xf32, #tpu.memory_space<vmem>>, vector<1x1x128xf32>
      tpu.vector_store %arg9[%c0_27, %c0_28, %c0_29], %52 {strides = array<i32>} : memref<1x1x128xf32, #tpu.memory_space<vmem>>, vector<1x1x128xf32>,
    } else {
    }
    return
  }
  func.func @transform_0(%arg0: i32) -> (i32, i32) {
    %c0_i32 = arith.constant 0 : i32
    %c0_i32_0 = arith.constant 0 : i32
    return %arg0, %c0_i32 : i32, i32
  }
  func.func @transform_1(%arg0: i32) -> (i32, i32) {
    %c0_i32 = arith.constant 0 : i32
    %c0_i32_0 = arith.constant 0 : i32
    %c0_i32_1 = arith.constant 0 : i32
    return %c0_i32, %c0_i32_0 : i32, i32
  }
  func.func @transform_2(%arg0: i32) -> (i32, i32) {
    %c0_i32 = arith.constant 0 : i32
    %c0_i32_0 = arith.constant 0 : i32
    %c0_i32_1 = arith.constant 0 : i32
    return %c0_i32, %c0_i32_0 : i32, i32
  }
  func.func @transform_3(%arg0: i32) -> (i32, i32) {
    %c0_i32 = arith.constant 0 : i32
    %c0_i32_0 = arith.constant 0 : i32
    %c0_i32_1 = arith.constant 0 : i32
    return %c0_i32, %c0_i32_0 : i32, i32
  }
  func.func @transform_4(%arg0: i32) -> (i32, i32) {
    %c0_i32 = arith.constant 0 : i32
    %c0_i32_0 = arith.constant 0 : i32
    %c0_i32_1 = arith.constant 0 : i32
    return %c0_i32, %c0_i32_0 : i32, i32
  }
  func.func @transform_5(%arg0: i32) -> (i32, i32) {
    %c0_i32 = arith.constant 0 : i32
    %c0_i32_0 = arith.constant 0 : i32
    %c0_i32_1 = arith.constant 0 : i32
    return %c0_i32, %c0_i32_0 : i32, i32
  }
  func.func @transform_6(%arg0: i32) -> (i32, i32) {
    %c0_i32 = arith.constant 0 : i32
    %c0_i32_0 = arith.constant 0 : i32
    %c0_i32_1 = arith.constant 0 : i32
    return %c0_i32, %c0_i32_0 : i32, i32
  }
  func.func @transform_7(%arg0: i32) -> (i32, i32, i32) {
    %c0_i32 = arith.constant 0 : i32
    %c0_i32_0 = arith.constant 0 : i32
    %c0_i32_1 = arith.constant 0 : i32
    return %arg0, %c0_i32, %c0_i32_0 : i32, i32, i32
  }
  func.func @transform_8(%arg0: i32) -> (i32, i32, i32) {
    %c0_i32 = arith.constant 0 : i32
    %c0_i32_0 = arith.constant 0 : i32
    %c0_i32_1 = arith.constant 0 : i32
    return %arg0, %c0_i32, %c0_i32_0 : i32, i32, i32
  }
}

</mosaic_0001>

<bundles_post_ra>
// kernel: tpu_custom_call.1
= control target key start
LH: loop header
LB: loop body
LE: loop exit
PB: predicated region body
PF: predicated region fallthrough
CT: control target
= control target key end

     0   :  { %s1722_s0 = inlined_call_operand.vmem [shape: f32[8,256], index: 0, kind: input, shape index: {}]   ;;  %s1723_s1 = inlined_call_operand.hbm [shape: bf16[256,128], index: 1, kind: input, shape index: {}]   ;;  %s1724_s2 = inlined_call_operand.vmem [shape: f32[1,128], index: 2, kind: input, shape index: {}]   ;;  %s1725_s3 = inlined_call_operand.vmem [shape: bf16[128,64], index: 3, kind: input, shape index: {}]   ;;  %s1726_s4 = inlined_call_operand.vmem [shape: f32[1,64], index: 4, kind: input, shape index: {}]   ;;  %s1727_s5 = inlined_call_operand.vmem [shape: f32[1,64], index: 5, kind: input, shape index: {}]   ;;  %s1728_s6 = inlined_call_operand.<no memory space> [shape: f32[1,1], index: 6, kind: input, shape index: {}]   ;;  %s1729_s7 = inlined_call_operand.vmem [shape: f32[1,1,128], index: 7, kind: input, shape index: {}]   ;;  %s1730_s8 = inlined_call_operand.hbm [shape: f32[1,1,128], index: 8, kind: output, shape index: {}]  }
   0x1   :  { %v13_v0 = vstv %s1728_s6 }
   0x2   :  { %14 = vst [vmem:[#allocation2] sm:$0x1] %v13_v0 }
   0x3   :  { %15 = vsyncpa [#allocation4], 0 }
   0x4   :  { %16 = vsyncpa [#allocation5], 0  ;;  %s1351_s29 = smov [#allocation3]   ;;  %s1303_s11 = scalar_lea.hbm %s1723_s1, 2048 }
   0x5   :  { %s24_s30 = sshll.u32 %s1351_s29, 4  ;;  %p1304_p0 = scmp.ne.s32.totalorder %s1723_s1, %s1303_s11  ;;  %s25_s30 = int_to_ptr.vmem [resolvable:$true] %s24_s30 }
   0x6   :  { %p1307_p1 = scmp.lt.u32.totalorder %s1303_s11, %s1723_s1 }
   0x8   :  { %p1309_p2 = pnand %p1307_p1, %p1304_p0 }
   0xa   :  { %1312 = shalt.err (!%p1309_p2)
}
   0xb   :  { %s1313_s6 = scalar_lea.vmem %s25_s30, 2048  ;;  %p1318_p4 = scmp.lt.s32.totalorder %s25_s30, %s25_s30 }
   0xc   :  { %p1314_p3 = scmp.ne.s32.totalorder %s25_s30, %s1313_s6  ;;  %p1319_p5 = scmp.lt.s32.totalorder %s1313_s6, %s1313_s6 }
   0xe   :  { %p1320_p6 = por %p1319_p5, %p1318_p4 }
  0x10   :  { %p1321_p7 = pnand %p1320_p6, %p1314_p3 }
  0x12   :  { %1324 = shalt.err (!%p1321_p7)
}
  0x13   :  { %s1352_s16 = smov 64   ;;  %s1353_s17 = smov 4  }
  0x14   :  { %30 = dma.hbm_to_vmem [thread:$0]  %s1723_s1, 2048, %s25_s30, [#allocation4], %s1352_s16, %s1352_s16, %s1353_s17  }
  0x15   :  { %1347 = dma.done.wait [#allocation4], 2048  }
  0x16   :  { %1348 = vsyncadd [#allocation4], 4294965248  ;;  %v1215_v1 = vld [vmem:[#allocation3 + $0x40] sm:$0xff]   ;;  %v1217_v3 = vld [vmem:[#allocation3 + $0x48] sm:$0xff]   ;;  %vm558_vm0 = vcmask 523264   ;;  %vm921_vm1 = vcmask 130112  }
  0x17   :  { %v1216_v2 = vld [vmem:[#allocation3] sm:$0xff]   ;;  %1096 = vmatprep.subr.bf16.mxu0 %v1215_v1  ;;  %v1218_v4 = vld [vmem:[#allocation3 + $0x8] sm:$0xff]   ;;  %v1219_v5 = vld [vmem:[#allocation3 + $0x50] sm:$0xff]   ;;  %vm928_vm2 = vcmask 195712   ;;  %vm935_vm3 = vcmask 261312   ;;  %vm942_vm4 = vcmask 326912  }
  0x18   :  { %1097 = vmatpush3.bf16.msra.mxu0 %v1216_v2  ;;  %v1220_v6 = vld [vmem:[#allocation3 + $0x10] sm:$0xff]   ;;  %v1221_v7 = vld [vmem:[#allocation3 + $0x58] sm:$0xff]   ;;  %v1223_v9 = vld [vmem:[#allocation3 + $0x60] sm:$0xff]   ;;  %vm949_vm5 = vcmask 392512   ;;  %vm956_vm6 = vcmask 458112   ;;  %vm963_vm7 = vcmask 523712  }
  0x19   :  { %1098 = vmatprep.subr.bf16.mxu0 %v1217_v3  ;;  %v1222_v8 = vld [vmem:[#allocation3 + $0x18] sm:$0xff]   ;;  %v1224_v10 = vld [vmem:[#allocation3 + $0x20] sm:$0xff]   ;;  %v1225_v11 = vld [vmem:[#allocation3 + $0x68] sm:$0xff]   ;;  %vm970_vm8 = vcmask 589312   ;;  %vm977_vm9 = vcmask 654912   ;;  %vm984_vm10 = vcmask 720512  }
  0x1a   :  { %v48_v12 = vld [vmem:[%s1722_s0 + $0x8] sm:$0xff]  ;;  %v50_v13 = vld [vmem:[%s1722_s0 + $0x18] sm:$0xff]  ;;  %v47_v20 = vld [vmem:[%s1722_s0] sm:$0xff]  ;;  %vm991_vm11 = vcmask 786112   ;;  %vm998_vm12 = vcmask 851712   ;;  %vm1005_vm13 = vcmask 917312  }
  0x1b   :  { %v80_v14 = vpack.c.bf16 %v50_v13, %v48_v12  ;;  %v1226_v15 = vld [vmem:[#allocation3 + $0x28] sm:$0xff]   ;;  %v1227_v16 = vld [vmem:[#allocation3 + $0x70] sm:$0xff]   ;;  %v1229_v18 = vld [vmem:[#allocation3 + $0x78] sm:$0xff]   ;;  %vm1012_vm14 = vcmask 982912   ;;  %vm1019_vm15 = vcmask 1048512  }
  0x1c   :  { %1099 = vmatpush3.bf16.msra.mxu0 %v1218_v4  ;;  %v1228_v17 = vld [vmem:[#allocation3 + $0x30] sm:$0xff]   ;;  %v1230_v19 = vld [vmem:[#allocation3 + $0x38] sm:$0xff]   ;;  %v52_v22 = vld [vmem:[%s1722_s0 + $0x28] sm:$0xff] }
  0x1d   :  { %1100 = vmatprep.subr.bf16.mxu0 %v1219_v5  ;;  %262 = vmatprep.mubr.bf16.mxu0 %v80_v14  ;;  %v49_v21 = vld [vmem:[%s1722_s0 + $0x10] sm:$0xff]  ;;  %v54_v23 = vld [vmem:[%s1722_s0 + $0x38] sm:$0xff]  ;;  %v1231_v24 = vld [vmem:[%s1725_s3] sm:$0xff]  }
  0x1e   :  { %v1232_v25 = vld [vmem:[%s1725_s3 + $0x8] sm:$0xff]   ;;  %1176 = vmatprep.subr.bf16.mxu1 %v1231_v24  ;;  %v1233_v26 = vld [vmem:[%s1725_s3 + $0x10] sm:$0xff]   ;;  %v79_v27 = vpack.c.bf16 %v49_v21, %v47_v20  ;;  %v82_v28 = vpack.c.bf16 %v54_v23, %v52_v22  ;;  %v51_v29 = vld [vmem:[%s1722_s0 + $0x20] sm:$0xff] }
  0x1f   :  { %1177 = vmatpush3.bf16.msra.mxu1 %v1231_v24  ;;  %v53_v30 = vld [vmem:[%s1722_s0 + $0x30] sm:$0xff]  ;;  %v56_v31 = vld [vmem:[%s1722_s0 + $0x48] sm:$0xff]  ;;  %v58_v32 = vld [vmem:[%s1722_s0 + $0x58] sm:$0xff] }
  0x20   :  { %1101 = vmatpush3.bf16.msra.mxu0 %v1220_v6  ;;  %1178 = vmatprep.subr.bf16.mxu1 %v1232_v25  ;;  %v81_v33 = vpack.c.bf16 %v53_v30, %v51_v29  ;;  %v84_v34 = vpack.c.bf16 %v58_v32, %v56_v31  ;;  %v55_v35 = vld [vmem:[%s1722_s0 + $0x40] sm:$0xff]  ;;  %v57_v36 = vld [vmem:[%s1722_s0 + $0x50] sm:$0xff]  ;;  %v60_v37 = vld [vmem:[%s1722_s0 + $0x68] sm:$0xff] }
  0x21   :  { %1102 = vmatprep.subr.bf16.mxu0 %v1221_v7  ;;  %v62_v38 = vld [vmem:[%s1722_s0 + $0x78] sm:$0xff]  ;;  %v83_v39 = vpack.c.bf16 %v57_v36, %v55_v35  ;;  %v59_v41 = vld [vmem:[%s1722_s0 + $0x60] sm:$0xff]  ;;  %v61_v42 = vld [vmem:[%s1722_s0 + $0x70] sm:$0xff] }
  0x22   :  { %v86_v40 = vpack.c.bf16 %v62_v38, %v60_v37  ;;  %v64_v43 = vld [vmem:[%s1722_s0 + $0x88] sm:$0xff]  ;;  %v66_v44 = vld [vmem:[%s1722_s0 + $0x98] sm:$0xff]  ;;  %v85_v45 = vpack.c.bf16 %v61_v42, %v59_v41  ;;  %v63_v47 = vld [vmem:[%s1722_s0 + $0x80] sm:$0xff] }
  0x23   :  { %1179 = vmatpush3.bf16.msra.mxu1 %v1232_v25  ;;  %v88_v46 = vpack.c.bf16 %v66_v44, %v64_v43  ;;  %v65_v48 = vld [vmem:[%s1722_s0 + $0x90] sm:$0xff]  ;;  %v68_v49 = vld [vmem:[%s1722_s0 + $0xa8] sm:$0xff]  ;;  %v70_v50 = vld [vmem:[%s1722_s0 + $0xb8] sm:$0xff] }
  0x24   :  { %1103 = vmatpush3.bf16.msra.mxu0 %v1222_v8  ;;  %1180 = vmatprep.subr.bf16.mxu1 %v1233_v26  ;;  %v87_v51 = vpack.c.bf16 %v65_v48, %v63_v47  ;;  %v90_v52 = vpack.c.bf16 %v70_v50, %v68_v49  ;;  %v67_v53 = vld [vmem:[%s1722_s0 + $0xa0] sm:$0xff]  ;;  %v69_v54 = vld [vmem:[%s1722_s0 + $0xb0] sm:$0xff]  ;;  %v72_v55 = vld [vmem:[%s1722_s0 + $0xc8] sm:$0xff] }
  0x25   :  { %1104 = vmatprep.subr.bf16.mxu0 %v1223_v9  ;;  %v74_v56 = vld [vmem:[%s1722_s0 + $0xd8] sm:$0xff]  ;;  %v89_v57 = vpack.c.bf16 %v69_v54, %v67_v53  ;;  %v71_v59 = vld [vmem:[%s1722_s0 + $0xc0] sm:$0xff]  ;;  %v73_v60 = vld [vmem:[%s1722_s0 + $0xd0] sm:$0xff] }
  0x26   :  { %v92_v58 = vpack.c.bf16 %v74_v56, %v72_v55  ;;  %v76_v61 = vld [vmem:[%s1722_s0 + $0xe8] sm:$0xff]  ;;  %v78_v62 = vld [vmem:[%s1722_s0 + $0xf8] sm:$0xff]  ;;  %v91_v63 = vpack.c.bf16 %v73_v60, %v71_v59  ;;  %v75_v1 = vld [vmem:[%s1722_s0 + $0xe0] sm:$0xff] }
  0x27   :  { %1181 = vmatpush3.bf16.msra.mxu1 %v1233_v26  ;;  %v94_v0 = vpack.c.bf16 %v78_v62, %v76_v61  ;;  %v77_v2 = vld [vmem:[%s1722_s0 + $0xf0] sm:$0xff]  ;;  %v1234_v4 = vld [vmem:[%s1725_s3 + $0x18] sm:$0xff]   ;;  %v1235_v5 = vld [vmem:[%s1725_s3 + $0x20] sm:$0xff]  }
  0x28   :  { %1105 = vmatpush3.bf16.msra.mxu0 %v1224_v10  ;;  %v93_v3 = vpack.c.bf16 %v77_v2, %v75_v1  ;;  %1182 = vmatprep.subr.bf16.mxu1 %v1234_v4  ;;  %v1236_v6 = vld [vmem:[%s1725_s3 + $0x28] sm:$0xff]   ;;  %v1237_v7 = vld [vmem:[%s1725_s3 + $0x30] sm:$0xff]   ;;  %v1238_v8 = vld [vmem:[%s1725_s3 + $0x38] sm:$0xff]  }
  0x29   :  { %1106 = vmatprep.subr.bf16.mxu0 %v1225_v11  ;;  %v1539_v9 = vld [vmem:[%s1729_s7] ss:$0 sm:$0xff]  ;;  %v1354_v11 = vmov 0  }
  0x2a   :  { %v607_v10 = vld [vmem:[#allocation2] sm:$0x1]  ;;  %736 = vbcast.lane.b32.xlu0 %v1539_v9, 256  ;;  %1213 = vset.pattern.permute.xlu1 %v1354_v11 }
  0x2b   :  { %1183 = vmatpush3.bf16.msra.mxu1 %v1234_v4  ;;  %610 = vperm.xlu1 %1213, %v607_v10   ;;  %v1551_v14 = vld [vmem:[%s1724_s2] ss:$0 sm:$0xff] }
  0x2c   :  { %1107 = vmatpush3.bf16.msra.mxu0 %v1226_v15  ;;  %1184 = vmatprep.subr.bf16.mxu1 %v1235_v5 }
  0x2d   :  { %1108 = vmatprep.subr.bf16.mxu0 %v1227_v16  ;;  %1214 = vset.pattern.permute.xlu0 %v1354_v11 }
  0x2e   :  { %744 = vbcast.lane.b32.xlu0 %v1539_v9, 272 }
  0x2f   :  { %1185 = vmatpush3.bf16.msra.mxu1 %v1235_v5  ;;  %740 = vbcast.lane.b32.xlu1 %v1539_v9, 264 }
  0x30   :  { %1109 = vmatpush3.bf16.msra.mxu0 %v1228_v17  ;;  %1186 = vmatprep.subr.bf16.mxu1 %v1236_v6 }
  0x31   :  { %1110 = vmatprep.subr.bf16.mxu0 %v1229_v18 }
  0x32   :  { %748 = vbcast.lane.b32.xlu0 %v1539_v9, 280 }
  0x33   :  { %1187 = vmatpush3.bf16.msra.mxu1 %v1236_v6  ;;  %760 = vbcast.lane.b32.xlu1 %v1539_v9, 304 }
  0x34   :  { %1111 = vmatpush3.bf16.msra.mxu0 %v1230_v19  ;;  %1188 = vmatprep.subr.bf16.mxu1 %v1237_v7 }
  0x36   :  { %752 = vbcast.lane.b32.xlu0 %v1539_v9, 288 }
  0x37   :  { %263 = vmatmul.mubr.bf16.vlgmr.msra.gmra.mrb[0].mxu0 %v79_v27  ;;  %1189 = vmatpush3.bf16.msra.mxu1 %v1237_v7 }
  0x38   :  { %270 = vmatprep.mubr.bf16.mxu0 %v82_v28  ;;  %1190 = vmatprep.subr.bf16.mxu1 %v1238_v8 }
  0x3a   :  { %756 = vbcast.lane.b32.xlu0 %v1539_v9, 296 }
  0x3b   :  { %1191 = vmatpush3.bf16.msra.mxu1 %v1238_v8 }
  0x3f   :  { %271 = vmatmul.mubr.bf16.gmra.mrb[4].mxu0 %v81_v33 }
  0x40   :  { %278 = vmatprep.mubr.bf16.mxu0 %v84_v34 }
  0x47   :  { %279 = vmatmul.mubr.bf16.gmra.mrb[8].mxu0 %v83_v39 }
  0x48   :  { %286 = vmatprep.mubr.bf16.mxu0 %v86_v40 }
  0x4f   :  { %287 = vmatmul.mubr.bf16.gmra.mrb[12].mxu0 %v85_v45 }
  0x50   :  { %294 = vmatprep.mubr.bf16.mxu0 %v88_v46 }
  0x57   :  { %295 = vmatmul.mubr.bf16.gmra.mrb[16].mxu0 %v87_v51 }
  0x58   :  { %302 = vmatprep.mubr.bf16.mxu0 %v90_v52 }
  0x5f   :  { %303 = vmatmul.mubr.bf16.gmra.mrb[20].mxu0 %v89_v57 }
  0x60   :  { %310 = vmatprep.mubr.bf16.mxu0 %v92_v58 }
  0x67   :  { %311 = vmatmul.mubr.bf16.gmra.mrb[24].mxu0 %v91_v63 }
  0x68   :  { %318 = vmatprep.mubr.bf16.mxu0 %v94_v0 }
  0x6f   :  { %319 = vmatmul.mubr.bf16.gmra.mrb[28].mxu0 %v93_v3 }
 0x10a   :  { %v1112_v12 = vpop.f32.mrb[0].mxu0 }
 0x10b   :  { %v1113_v13 = vpop.f32.mrb[1].mxu0 }
 0x10c   :  { %v1114_v15 = vadd.f32 %v1113_v13, %v1112_v12  ;;  %v1115_v16 = vpop.f32.mrb[2].mxu0 }
 0x10d   :  { %v1116_v17 = vpop.f32.mrb[3].mxu0 }
 0x10e   :  { %v1117_v18 = vadd.f32 %v1116_v17, %v1115_v16  ;;  %v265_v19 = vadd.f32 %v1114_v15, %v1551_v14 }
 0x110   :  { %v268_v20 = vadd.f32 %v1117_v18, %v1551_v14  ;;  %v327_v22 = vmax.f32 %v265_v19, 0.0 }
 0x112   :  { %v1118_v21 = vpop.f32.mrb[4].mxu0  ;;  %v328_v23 = vmax.f32 %v268_v20, 0.0 }
 0x113   :  { %v1119_v24 = vpop.f32.mrb[5].mxu0 }
 0x114   :  { %v1120_v25 = vadd.f32 %v1119_v24, %v1118_v21  ;;  %v1121_v26 = vpop.f32.mrb[6].mxu0  ;;  %v343_v27 = vpack.c.bf16 %v328_v23, %v327_v22 }
 0x115   :  { %v1122_v28 = vpop.f32.mrb[7].mxu0 }
 0x116   :  { %v273_v29 = vadd.f32 %v1120_v25, %v1551_v14  ;;  %v1123_v30 = vadd.f32 %v1122_v28, %v1121_v26  ;;  %1192 = vmatprep.mubr.bf16.mxu1 %v343_v27 }
 0x118   :  { %v276_v31 = vadd.f32 %v1123_v30, %v1551_v14  ;;  %v329_v32 = vmax.f32 %v273_v29, 0.0 }
 0x11a   :  { %v330_v33 = vmax.f32 %v276_v31, 0.0  ;;  %v1124_v34 = vpop.f32.mrb[8].mxu0 }
 0x11b   :  { %v1125_v35 = vpop.f32.mrb[9].mxu0 }
 0x11c   :  { %v1126_v36 = vadd.f32 %v1125_v35, %v1124_v34  ;;  %v1127_v37 = vpop.f32.mrb[10].mxu0  ;;  %v344_v38 = vpack.c.bf16 %v330_v33, %v329_v32 }
 0x11d   :  { %v1128_v39 = vpop.f32.mrb[11].mxu0 }
 0x11e   :  { %v281_v40 = vadd.f32 %v1126_v36, %v1551_v14  ;;  %v1129_v41 = vadd.f32 %v1128_v39, %v1127_v37  ;;  %1193 = vmatmul.mubr.bf16.vlgmr.msra.gmra.mrb[0].mxu1 %v344_v38  ;;  %v1572_v39 = vld [vmem:[%s1726_s4] ss:$0 sm:$0xff]  ;;  %s1355_s4 = smov [#allocation6]  }
 0x120   :  { %v284_v42 = vadd.f32 %v1129_v41, %v1551_v14  ;;  %v331_v43 = vmax.f32 %v281_v40, 0.0 }
 0x122   :  { %v332_v44 = vmax.f32 %v284_v42, 0.0  ;;  %v1130_v45 = vpop.f32.mrb[12].mxu0 }
 0x123   :  { %v1131_v46 = vpop.f32.mrb[13].mxu0 }
 0x124   :  { %v1132_v47 = vadd.f32 %v1131_v46, %v1130_v45  ;;  %v1133_v48 = vpop.f32.mrb[14].mxu0  ;;  %v345_v49 = vpack.c.bf16 %v332_v44, %v331_v43 }
 0x125   :  { %v1134_v50 = vpop.f32.mrb[15].mxu0 }
 0x126   :  { %v289_v51 = vadd.f32 %v1132_v47, %v1551_v14  ;;  %v1135_v52 = vadd.f32 %v1134_v50, %v1133_v48  ;;  %1196 = vmatprep.mubr.bf16.mxu1 %v345_v49 }
 0x128   :  { %v292_v53 = vadd.f32 %v1135_v52, %v1551_v14  ;;  %v333_v54 = vmax.f32 %v289_v51, 0.0 }
 0x12a   :  { %v334_v55 = vmax.f32 %v292_v53, 0.0  ;;  %v1136_v56 = vpop.f32.mrb[16].mxu0 }
 0x12b   :  { %v1137_v57 = vpop.f32.mrb[17].mxu0 }
 0x12c   :  { %v1138_v58 = vadd.f32 %v1137_v57, %v1136_v56  ;;  %v1139_v59 = vpop.f32.mrb[18].mxu0  ;;  %v346_v60 = vpack.c.bf16 %v334_v55, %v333_v54 }
 0x12d   :  { %v1140_v61 = vpop.f32.mrb[19].mxu0 }
 0x12e   :  { %v297_v62 = vadd.f32 %v1138_v58, %v1551_v14  ;;  %v1141_v63 = vadd.f32 %v1140_v61, %v1139_v59  ;;  %1197 = vmatmul.mubr.bf16.gmra.mrb[4].mxu1 %v346_v60 }
 0x130   :  { %v300_v0 = vadd.f32 %v1141_v63, %v1551_v14  ;;  %v335_v1 = vmax.f32 %v297_v62, 0.0 }
 0x132   :  { %v336_v2 = vmax.f32 %v300_v0, 0.0  ;;  %v1142_v3 = vpop.f32.mrb[20].mxu0 }
 0x133   :  { %v1143_v4 = vpop.f32.mrb[21].mxu0 }
 0x134   :  { %v1144_v5 = vadd.f32 %v1143_v4, %v1142_v3  ;;  %v1145_v6 = vpop.f32.mrb[22].mxu0  ;;  %v347_v7 = vpack.c.bf16 %v336_v2, %v335_v1 }
 0x135   :  { %v1146_v8 = vpop.f32.mrb[23].mxu0 }
 0x136   :  { %v305_v10 = vadd.f32 %v1144_v5, %v1551_v14  ;;  %v1147_v11 = vadd.f32 %v1146_v8, %v1145_v6  ;;  %1200 = vmatprep.mubr.bf16.mxu1 %v347_v7 }
 0x138   :  { %v308_v12 = vadd.f32 %v1147_v11, %v1551_v14  ;;  %v337_v13 = vmax.f32 %v305_v10, 0.0 }
 0x13a   :  { %v338_v15 = vmax.f32 %v308_v12, 0.0  ;;  %v1148_v16 = vpop.f32.mrb[24].mxu0 }
 0x13b   :  { %v1149_v17 = vpop.f32.mrb[25].mxu0 }
 0x13c   :  { %v1150_v18 = vadd.f32 %v1149_v17, %v1148_v16  ;;  %v1151_v19 = vpop.f32.mrb[26].mxu0  ;;  %v348_v20 = vpack.c.bf16 %v338_v15, %v337_v13 }
 0x13d   :  { %v1152_v21 = vpop.f32.mrb[27].mxu0 }
 0x13e   :  { %v313_v22 = vadd.f32 %v1150_v18, %v1551_v14  ;;  %v1153_v23 = vadd.f32 %v1152_v21, %v1151_v19  ;;  %1201 = vmatmul.mubr.bf16.gmra.mrb[8].mxu1 %v348_v20 }
 0x140   :  { %v316_v24 = vadd.f32 %v1153_v23, %v1551_v14  ;;  %v339_v25 = vmax.f32 %v313_v22, 0.0 }
 0x142   :  { %v340_v26 = vmax.f32 %v316_v24, 0.0  ;;  %v1154_v27 = vpop.f32.mrb[28].mxu0 }
 0x143   :  { %v1155_v28 = vpop.f32.mrb[29].mxu0 }
 0x144   :  { %v1156_v29 = vadd.f32 %v1155_v28, %v1154_v27  ;;  %v1157_v30 = vpop.f32.mrb[30].mxu0  ;;  %v349_v31 = vpack.c.bf16 %v340_v26, %v339_v25 }
 0x145   :  { %v1158_v32 = vpop.f32.mrb[31].mxu0 }
 0x146   :  { %v321_v33 = vadd.f32 %v1156_v29, %v1551_v14  ;;  %v1159_v34 = vadd.f32 %v1158_v32, %v1157_v30  ;;  %1204 = vmatprep.mubr.bf16.mxu1 %v349_v31 }
 0x148   :  { %v324_v35 = vadd.f32 %v1159_v34, %v1551_v14  ;;  %v341_v36 = vmax.f32 %v321_v33, 0.0  ;;  %v1579_v14 = vld [vmem:[%s1727_s5] ss:$0 sm:$0xff]  ;;  %s1043_s5 = sshll.u32 %s1355_s4, 4  ;;  %s1044_s5 = int_to_ptr.vmem [resolvable:$true] %s1043_s5 }
 0x149   :  { %s1325_s9 = scalar_lea.vmem %s1044_s5, 16  ;;  %s1329_s10 = scalar_lea.vmem %s1044_s5, 32 }
 0x14a   :  { %v342_v37 = vmax.f32 %v324_v35, 0.0  ;;  %p1326_p8 = scmp.ne.s32.totalorder %s1044_s5, %s1325_s9  ;;  %p1330_p9 = scmp.lt.s32.totalorder %s1044_s5, %s1044_s5 }
 0x14b   :  { %p1331_p10 = scmp.lt.s32.totalorder %s1329_s10, %s1325_s9 }
 0x14c   :  { %v350_v38 = vpack.c.bf16 %v342_v37, %v341_v36 }
 0x14d   :  { %p1332_p11 = por %p1331_p10, %p1330_p9 }
 0x14e   :  { %1205 = vmatmul.mubr.bf16.gmra.mrb[12].mxu1 %v350_v38 }
 0x14f   :  { %p1333_p12 = pnand %p1332_p11, %p1326_p8 }
 0x1f1   :  { %v1194_v40 = vpop.f32.mrb[0].mxu1 }
 0x1f2   :  { %v465_v41 = vadd.f32 %v1194_v40, %v1572_v39  ;;  %v456_v42 = vpop.f32.mrb[1].mxu1 }
 0x1f3   :  { %v457_v43 = vadd.f32 %v1572_v39, %v456_v42  ;;  %v1195_v44 = vpop.f32.mrb[2].mxu1 }
 0x1f4   :  { %v521_v45 = vmax.f32 %v465_v41, 0.0  ;;  %v468_v46 = vadd.f32 %v1195_v44, %v1572_v39  ;;  %v459_v47 = vpop.f32.mrb[3].mxu1 }
 0x1f5   :  { %v519_v48 = vmax.f32 %v457_v43, 0.0  ;;  %v460_v49 = vadd.f32 %v1572_v39, %v459_v47 }
 0x1f6   :  { %v522_v50 = vmax.f32 %v468_v46, 0.0  ;;  %v544_v51 = vmul.f32 %v1579_v14, %v521_v45 }
 0x1f7   :  { %v520_v52 = vmax.f32 %v460_v49, 0.0  ;;  %v542_v53 = vmul.f32 %v1579_v14, %v519_v48 }
 0x1f8   :  { %v565_v54 = vsel %vm558_vm0, %v544_v51, 0.0  ;;  %v545_v55 = vmul.f32 %v1579_v14, %v522_v50 }
 0x1f9   :  { %566 = vadd.xlane.f32.xlu1 %v565_v54  ;;  %v559_v56 = vsel %vm558_vm0, %v542_v53, 0.0  ;;  %v543_v57 = vmul.f32 %v1579_v14, %v520_v52 }
 0x1fa   :  { %560 = vadd.xlane.f32.xlu0 %v559_v56  ;;  %v568_v58 = vsel %vm558_vm0, %v545_v55, 0.0 }
 0x1fb   :  { %v562_v59 = vsel %vm558_vm0, %v543_v57, 0.0 }
 0x1fd   :  { %569 = vadd.xlane.f32.xlu1 %v568_v58 }
 0x1fe   :  { %563 = vadd.xlane.f32.xlu0 %v562_v59  ;;  %v611_v59 = vpop.permute.xlu1 %610 }
 0x201   :  { %v1198_v60 = vpop.f32.mrb[4].mxu1 }
 0x202   :  { %v481_v61 = vadd.f32 %v1198_v60, %v1572_v39  ;;  %v472_v62 = vpop.f32.mrb[5].mxu1 }
 0x203   :  { %v473_v63 = vadd.f32 %v1572_v39, %v472_v62  ;;  %v1199_v0 = vpop.f32.mrb[6].mxu1  ;;  %v1638_v62 = vpop.permute.xlu1 %740 }
 0x204   :  { %v525_v1 = vmax.f32 %v481_v61, 0.0  ;;  %v484_v2 = vadd.f32 %v1199_v0, %v1572_v39  ;;  %v475_v3 = vpop.f32.mrb[7].mxu1  ;;  %v613_v61 = vlaneseq }
 0x205   :  { %v523_v4 = vmax.f32 %v473_v63, 0.0  ;;  %v476_v5 = vadd.f32 %v1572_v39, %v475_v3 }
 0x206   :  { %v548_v6 = vmul.f32 %v1579_v14, %v525_v1  ;;  %v526_v8 = vmax.f32 %v484_v2, 0.0  ;;  %v1643_v0 = vshrl.u32 %v613_v61, 7 }
 0x207   :  { %v524_v7 = vmax.f32 %v476_v5, 0.0  ;;  %v546_v11 = vmul.f32 %v1579_v14, %v523_v4  ;;  %v1646_v2 = vpop.permute.xlu1 %760 }
 0x208   :  { %v577_v10 = vsel %vm558_vm0, %v548_v6, 0.0  ;;  %v549_v16 = vmul.f32 %v1579_v14, %v526_v8  ;;  %v615_v1 = vsub.s32 0, %v1643_v0 }
 0x209   :  { %578 = vadd.xlane.f32.xlu0 %v577_v10  ;;  %v547_v12 = vmul.f32 %v1579_v14, %v524_v7  ;;  %v571_v15 = vsel %vm558_vm0, %v546_v11, 0.0 }
 0x20a   :  { %v580_v17 = vsel %vm558_vm0, %v549_v16, 0.0 }
 0x20b   :  { %v574_v13 = vsel %vm558_vm0, %v547_v12, 0.0 }
 0x20c   :  { %575 = vadd.xlane.f32.xlu1 %v574_v13 }
 0x20d   :  { %572 = vadd.xlane.f32.xlu0 %v571_v15 }
 0x211   :  { %v1202_v18 = vpop.f32.mrb[8].mxu1  ;;  %581 = vadd.xlane.f32.xlu0 %v580_v17 }
 0x212   :  { %v497_v19 = vadd.f32 %v1202_v18, %v1572_v39  ;;  %v488_v20 = vpop.f32.mrb[9].mxu1 }
 0x213   :  { %v489_v21 = vadd.f32 %v1572_v39, %v488_v20  ;;  %v1203_v22 = vpop.f32.mrb[10].mxu1 }
 0x214   :  { %v529_v23 = vmax.f32 %v497_v19, 0.0  ;;  %v500_v24 = vadd.f32 %v1203_v22, %v1572_v39  ;;  %v491_v25 = vpop.f32.mrb[11].mxu1 }
 0x215   :  { %v527_v26 = vmax.f32 %v489_v21, 0.0  ;;  %v492_v27 = vadd.f32 %v1572_v39, %v491_v25 }
 0x216   :  { %v530_v28 = vmax.f32 %v500_v24, 0.0  ;;  %v552_v29 = vmul.f32 %v1579_v14, %v529_v23 }
 0x217   :  { %v528_v30 = vmax.f32 %v492_v27, 0.0  ;;  %v550_v33 = vmul.f32 %v1579_v14, %v527_v26 }
 0x218   :  { %v589_v31 = vsel %vm558_vm0, %v552_v29, 0.0  ;;  %v553_v32 = vmul.f32 %v1579_v14, %v530_v28 }
 0x219   :  { %590 = vadd.xlane.f32.xlu0 %v589_v31  ;;  %v583_v35 = vsel %vm558_vm0, %v550_v33, 0.0  ;;  %v551_v36 = vmul.f32 %v1579_v14, %v528_v30 }
 0x21a   :  { %v592_v34 = vsel %vm558_vm0, %v553_v32, 0.0 }
 0x21b   :  { %593 = vadd.xlane.f32.xlu1 %v592_v34  ;;  %v586_v37 = vsel %vm558_vm0, %v551_v36, 0.0 }
 0x21d   :  { %584 = vadd.xlane.f32.xlu0 %v583_v35 }
 0x221   :  { %v1206_v38 = vpop.f32.mrb[12].mxu1  ;;  %587 = vadd.xlane.f32.xlu0 %v586_v37 }
 0x222   :  { %v513_v40 = vadd.f32 %v1206_v38, %v1572_v39  ;;  %v504_v41 = vpop.f32.mrb[13].mxu1 }
 0x223   :  { %v505_v42 = vadd.f32 %v1572_v39, %v504_v41  ;;  %v1207_v43 = vpop.f32.mrb[14].mxu1 }
 0x224   :  { %v533_v44 = vmax.f32 %v513_v40, 0.0  ;;  %v516_v45 = vadd.f32 %v1207_v43, %v1572_v39  ;;  %v507_v46 = vpop.f32.mrb[15].mxu1 }
 0x225   :  { %v531_v47 = vmax.f32 %v505_v42, 0.0  ;;  %v508_v50 = vadd.f32 %v1572_v39, %v507_v46 }
 0x226   :  { %v556_v48 = vmul.f32 %v1579_v14, %v533_v44  ;;  %v534_v49 = vmax.f32 %v516_v45, 0.0 }
 0x227   :  { %v554_v52 = vmul.f32 %v1579_v14, %v531_v47  ;;  %v532_v53 = vmax.f32 %v508_v50, 0.0 }
 0x228   :  { %v601_v51 = vsel %vm558_vm0, %v556_v48, 0.0  ;;  %v557_v55 = vmul.f32 %v1579_v14, %v534_v49 }
 0x229   :  { %602 = vadd.xlane.f32.xlu0 %v601_v51  ;;  %v595_v54 = vsel %vm558_vm0, %v554_v52, 0.0  ;;  %v555_v57 = vmul.f32 %v1579_v14, %v532_v53  ;;  %v737_v14 = vpop.permute.xlu0 %736 }
 0x22a   :  { %v604_v56 = vsel %vm558_vm0, %v557_v55, 0.0 }
 0x22b   :  { %v598_v39 = vsel %vm558_vm0, %v555_v57, 0.0 }
 0x22c   :  { %768 = vbcast.lane.b32.xlu1 %v1539_v9, 320 }
 0x22d   :  { %596 = vadd.xlane.f32.xlu0 %v595_v54  ;;  %v745_v58 = vpop.permute.xlu0 %744 }
 0x230   :  { %776 = vbcast.lane.b32.xlu1 %v1539_v9, 336 }
 0x231   :  { %605 = vadd.xlane.f32.xlu0 %v604_v56  ;;  %v1636_v60 = vpop.permute.xlu0 %748 }
 0x234   :  { %784 = vbcast.lane.b32.xlu1 %v1539_v9, 352 }
 0x235   :  { %599 = vadd.xlane.f32.xlu0 %v598_v39  ;;  %v1640_v63 = vpop.permute.xlu0 %752 }
 0x238   :  { %792 = vbcast.lane.b32.xlu1 %v1539_v9, 368 }
 0x239   :  { %v1648_v3 = vpop.permute.xlu0 %756 }
 0x24b   :  { %764 = vbcast.lane.b32.xlu0 %v1539_v9, 312 }
 0x24f   :  { %772 = vbcast.lane.b32.xlu0 %v1539_v9, 328 }
 0x253   :  { %780 = vbcast.lane.b32.xlu0 %v1539_v9, 344 }
 0x257   :  { %788 = vbcast.lane.b32.xlu0 %v1539_v9, 360 }
 0x25b   :  { %796 = vbcast.lane.b32.xlu0 %v1539_v9, 376  ;;  %v1650_v9 = vrot.slane %v611_v59, %v615_v1 }
 0x286   :  { %v567_v4 = vpop.xlane.xlu1 %566 }
 0x287   :  { %v619_v5 = vadd.f32 %v1650_v9, %v567_v4  ;;  %v561_v6 = vpop.xlane.xlu0 %560 }
 0x288   :  { %v617_v7 = vadd.f32 %v1650_v9, %v561_v6 }
 0x289   :  { %v1081_v8 = vmul.f32 -1.442695, %v619_v5 }
 0x28a   :  { %v1079_v10 = vmul.f32 -1.442695, %v617_v7  ;;  %v570_v11 = vpop.xlane.xlu1 %569 }
 0x28b   :  { %1239 = vpow2.f32 %v1081_v8  ;;  %v620_v12 = vadd.f32 %v1650_v9, %v570_v11  ;;  %v564_v13 = vpop.xlane.xlu0 %563 }
 0x28c   :  { %1241 = vpow2.f32 %v1079_v10  ;;  %v618_v15 = vadd.f32 %v1650_v9, %v564_v13 }
 0x28d   :  { %v1082_v16 = vmul.f32 -1.442695, %v620_v12 }
 0x28e   :  { %v1080_v17 = vmul.f32 -1.442695, %v618_v15 }
 0x28f   :  { %1243 = vpow2.f32 %v1082_v16 }
 0x290   :  { %1245 = vpow2.f32 %v1080_v17 }
 0x295   :  { %v1240_v18 = vpop.eup %1239 }
 0x296   :  { %v1242_v19 = vpop.eup %1241  ;;  %v683_v20 = vadd.f32 1.0, %v1240_v18  ;;  %v579_v21 = vpop.xlane.xlu0 %578 }
 0x297   :  { %v681_v22 = vadd.f32 1.0, %v1242_v19  ;;  %v623_v23 = vadd.f32 %v1650_v9, %v579_v21 }
 0x298   :  { %1247 = vrcp.f32 %v683_v20 }
 0x299   :  { %v1244_v24 = vpop.eup %1243  ;;  %1249 = vrcp.f32 %v681_v22  ;;  %v1085_v25 = vmul.f32 -1.442695, %v623_v23  ;;  %v576_v31 = vpop.xlane.xlu1 %575 }
 0x29a   :  { %v1246_v26 = vpop.eup %1245  ;;  %v684_v27 = vadd.f32 1.0, %v1244_v24  ;;  %v573_v28 = vpop.xlane.xlu0 %572  ;;  %v622_v33 = vadd.f32 %v1650_v9, %v576_v31 }
 0x29b   :  { %v682_v29 = vadd.f32 1.0, %v1246_v26  ;;  %1251 = vpow2.f32 %v1085_v25  ;;  %v621_v30 = vadd.f32 %v1650_v9, %v573_v28 }
 0x29c   :  { %1253 = vrcp.f32 %v684_v27  ;;  %v1084_v38 = vmul.f32 -1.442695, %v622_v33 }
 0x29d   :  { %1255 = vrcp.f32 %v682_v29  ;;  %v1083_v32 = vmul.f32 -1.442695, %v621_v30 }
 0x29e   :  { %v582_v34 = vpop.xlane.xlu0 %581 }
 0x29f   :  { %1257 = vpow2.f32 %v1083_v32  ;;  %v624_v36 = vadd.f32 %v1650_v9, %v582_v34 }
 0x2a0   :  { %1259 = vpow2.f32 %v1084_v38 }
 0x2a1   :  { %v1086_v46 = vmul.f32 -1.442695, %v624_v36 }
 0x2a2   :  { %v1248_v35 = vpop.eup %1247 }
 0x2a3   :  { %v1250_v37 = vpop.eup %1249  ;;  %v816_v40 = vsub.f32 %v1248_v35, %v745_v58 }
 0x2a4   :  { %v814_v43 = vsub.f32 %v1250_v37, %v737_v14 }
 0x2a5   :  { %v1252_v41 = vpop.eup %1251  ;;  %v832_v42 = vmul.f32 %v816_v40, %v816_v40 }
 0x2a6   :  { %v1254_v44 = vpop.eup %1253  ;;  %v687_v45 = vadd.f32 1.0, %v1252_v41  ;;  %v591_v47 = vpop.xlane.xlu0 %590  ;;  %v830_v55 = vmul.f32 %v814_v43, %v814_v43 }
 0x2a7   :  { %v1256_v48 = vpop.eup %1255  ;;  %v627_v49 = vadd.f32 %v1650_v9, %v591_v47  ;;  %869 = vperm.xlu1 %1213, %v832_v42   ;;  %v817_v56 = vsub.f32 %v1254_v44, %v1636_v60 }
 0x2a8   :  { %1261 = vrcp.f32 %v687_v45  ;;  %v594_v50 = vpop.xlane.xlu1 %593  ;;  %v815_v51 = vsub.f32 %v1256_v48, %v1638_v62 }
 0x2a9   :  { %v1258_v52 = vpop.eup %1257  ;;  %v1089_v53 = vmul.f32 -1.442695, %v627_v49  ;;  %v628_v54 = vadd.f32 %v1650_v9, %v594_v50  ;;  %1263 = vpow2.f32 %v1086_v46  ;;  %v833_v62 = vmul.f32 %v817_v56, %v817_v56 }
 0x2aa   :  { %v685_v57 = vadd.f32 1.0, %v1258_v52  ;;  %v585_v39 = vpop.xlane.xlu0 %584  ;;  %v831_v14 = vmul.f32 %v815_v51, %v815_v51  ;;  %v1260_v6 = vpop.eup %1259 }
 0x2ab   :  { %v625_v58 = vadd.f32 %v1650_v9, %v585_v39  ;;  %863 = vperm.xlu1 %1213, %v830_v55   ;;  %v1090_v59 = vmul.f32 -1.442695, %v628_v54  ;;  %v686_v11 = vadd.f32 1.0, %v1260_v6 }
 0x2ac   :  { %1265 = vrcp.f32 %v685_v57  ;;  %866 = vperm.xlu0 %1214, %v831_v14   ;;  %v769_v27 = vpop.permute.xlu1 %768 }
 0x2ad   :  { %1267 = vpow2.f32 %v1089_v53  ;;  %v1087_v1 = vmul.f32 -1.442695, %v625_v58 }
 0x2ae   :  { %v588_v4 = vpop.xlane.xlu0 %587 }
 0x2af   :  { %1269 = vpow2.f32 %v1087_v1  ;;  %v626_v5 = vadd.f32 %v1650_v9, %v588_v4  ;;  %872 = vperm.xlu1 %1213, %v833_v62  }
 0x2b0   :  { %1271 = vpow2.f32 %v1090_v59  ;;  %v777_v34 = vpop.permute.xlu1 %776 }
 0x2b1   :  { %v1088_v60 = vmul.f32 -1.442695, %v626_v5 }
 0x2b2   :  { %v1262_v7 = vpop.eup %1261 }
 0x2b3   :  { %1273 = vpow2.f32 %v1088_v60  ;;  %v820_v8 = vsub.f32 %v1262_v7, %v1646_v2  ;;  %v1264_v10 = vpop.eup %1263 }
 0x2b4   :  { %v688_v17 = vadd.f32 1.0, %v1264_v10  ;;  %1275 = vrcp.f32 %v686_v11  ;;  %v785_v1 = vpop.permute.xlu1 %784 }
 0x2b5   :  { %v836_v12 = vmul.f32 %v820_v8, %v820_v8 }
 0x2b6   :  { %v1266_v13 = vpop.eup %1265  ;;  %v603_v15 = vpop.xlane.xlu0 %602 }
 0x2b7   :  { %v1268_v16 = vpop.eup %1267  ;;  %v631_v18 = vadd.f32 %v1650_v9, %v603_v15  ;;  %881 = vperm.xlu0 %1214, %v836_v12   ;;  %v818_v19 = vsub.f32 %v1266_v13, %v1640_v63 }
 0x2b8   :  { %v691_v20 = vadd.f32 1.0, %v1268_v16  ;;  %v793_v8 = vpop.permute.xlu1 %792 }
 0x2b9   :  { %v1270_v21 = vpop.eup %1269  ;;  %v1093_v22 = vmul.f32 -1.442695, %v631_v18  ;;  %v834_v23 = vmul.f32 %v818_v19, %v818_v19 }
 0x2ba   :  { %1277 = vrcp.f32 %v691_v20  ;;  %v689_v24 = vadd.f32 1.0, %v1270_v21  ;;  %v597_v2 = vpop.xlane.xlu0 %596  ;;  %v1272_v25 = vpop.eup %1271 }
 0x2bb   :  { %1279 = vrcp.f32 %v688_v17  ;;  %v629_v26 = vadd.f32 %v1650_v9, %v597_v2  ;;  %875 = vperm.xlu0 %1214, %v834_v23   ;;  %v692_v30 = vadd.f32 1.0, %v1272_v25 }
 0x2bc   :  { %1281 = vrcp.f32 %v689_v24  ;;  %v1674_v24 = vand.u32 127, %v613_v61 }
 0x2bd   :  { %v1274_v28 = vpop.eup %1273  ;;  %1283 = vpow2.f32 %v1093_v22  ;;  %v1091_v29 = vmul.f32 -1.442695, %v629_v26 }
 0x2be   :  { %v606_v63 = vpop.xlane.xlu0 %605  ;;  %v690_v32 = vadd.f32 1.0, %v1274_v28  ;;  %v1276_v36 = vpop.eup %1275  ;;  %v916_v2 = vadd.s32 4294967288, %v1674_v24 }
 0x2bf   :  { %1285 = vpow2.f32 %v1091_v29  ;;  %v632_v31 = vadd.f32 %v1650_v9, %v606_v63  ;;  %v819_v53 = vsub.f32 %v1276_v36, %v1648_v3  ;;  %v923_v29 = vadd.s32 4294967280, %v1674_v24 }
 0x2c0   :  { %1287 = vrcp.f32 %v692_v30  ;;  %v919_v28 = vsub.s32 %v916_v2, %v1643_v0  ;;  %v930_v30 = vadd.s32 4294967272, %v1674_v24  ;;  %v944_v36 = vadd.s32 4294967256, %v1674_v24 }
 0x2c1   :  { %v1094_v33 = vmul.f32 -1.442695, %v632_v31  ;;  %v835_v57 = vmul.f32 %v819_v53, %v819_v53  ;;  %v937_v31 = vadd.s32 4294967264, %v1674_v24  ;;  %v926_v61 = vsub.s32 %v923_v29, %v1643_v0 }
 0x2c2   :  { %v600_v35 = vpop.xlane.xlu0 %599  ;;  %v1014_v2 = vadd.s32 4294967176, %v1674_v24 }
 0x2c3   :  { %1289 = vpow2.f32 %v1094_v33  ;;  %v630_v37 = vadd.f32 %v1650_v9, %v600_v35  ;;  %v933_v35 = vsub.s32 %v930_v30, %v1643_v0 }
 0x2c4   :  { %v1278_v38 = vpop.eup %1277  ;;  %1291 = vrcp.f32 %v690_v32 }
 0x2c5   :  { %v1280_v40 = vpop.eup %1279  ;;  %v824_v41 = vsub.f32 %v1278_v38, %v777_v34  ;;  %v1092_v42 = vmul.f32 -1.442695, %v630_v37  ;;  %v940_v37 = vsub.s32 %v937_v31, %v1643_v0  ;;  %v1017_v31 = vsub.s32 %v1014_v2, %v1643_v0 }
 0x2c6   :  { %v1282_v43 = vpop.eup %1281  ;;  %v765_v44 = vpop.permute.xlu0 %764 }
 0x2c7   :  { %v1284_v45 = vpop.eup %1283  ;;  %v822_v46 = vsub.f32 %v1282_v43, %v769_v27  ;;  %v840_v47 = vmul.f32 %v824_v41, %v824_v41  ;;  %1293 = vpow2.f32 %v1092_v42  ;;  %v821_v48 = vsub.f32 %v1280_v40, %v765_v44 }
 0x2c8   :  { %v695_v49 = vadd.f32 1.0, %v1284_v45  ;;  %v914_v27 = vsub.s32 %v1674_v24, %v1643_v0  ;;  %v951_v42 = vadd.s32 4294967248, %v1674_v24  ;;  %v947_v45 = vsub.s32 %v944_v36, %v1643_v0 }
 0x2c9   :  { %v1286_v50 = vpop.eup %1285  ;;  %v838_v51 = vmul.f32 %v822_v46, %v822_v46  ;;  %v837_v52 = vmul.f32 %v821_v48, %v821_v48  ;;  %893 = vperm.xlu0 %1214, %v840_v47   ;;  %v958_v48 = vadd.s32 4294967240, %v1674_v24 }
 0x2ca   :  { %v693_v9 = vadd.f32 1.0, %v1286_v50  ;;  %v773_v54 = vpop.permute.xlu0 %772  ;;  %1295 = vrcp.f32 %v695_v49  ;;  %v1288_v55 = vpop.eup %1287  ;;  %v954_v49 = vsub.s32 %v951_v42, %v1643_v0 }
 0x2cb   :  { %884 = vperm.xlu1 %1213, %v837_v52  }
 0x2cc   :  { %1297 = vrcp.f32 %v693_v9  ;;  %v972_v9 = vadd.s32 4294967224, %v1674_v24 }
 0x2cd   :  { %v1290_v56 = vpop.eup %1289  ;;  %887 = vperm.xlu0 %1214, %v838_v51  }
 0x2ce   :  { %v1292_v39 = vpop.eup %1291  ;;  %v781_v14 = vpop.permute.xlu0 %780  ;;  %v696_v58 = vadd.f32 1.0, %v1290_v56  ;;  %v961_v56 = vsub.s32 %v958_v48, %v1643_v0 }
 0x2cf   :  { %v825_v59 = vsub.f32 %v1288_v55, %v781_v14  ;;  %878 = vperm.xlu1 %1213, %v835_v57   ;;  %v823_v4 = vsub.f32 %v1292_v39, %v773_v54  ;;  %v965_v55 = vadd.s32 4294967232, %v1674_v24 }
 0x2d0   :  { %1299 = vrcp.f32 %v696_v58  ;;  %v975_v58 = vsub.s32 %v972_v9, %v1643_v0 }
 0x2d1   :  { %v1294_v62 = vpop.eup %1293  ;;  %v841_v5 = vmul.f32 %v825_v59, %v825_v59  ;;  %v839_v60 = vmul.f32 %v823_v4, %v823_v4  ;;  %v979_v59 = vadd.s32 4294967216, %v1674_v24 }
 0x2d2   :  { %v694_v6 = vadd.f32 1.0, %v1294_v62  ;;  %v789_v11 = vpop.permute.xlu0 %788 }
 0x2d3   :  { %896 = vperm.xlu1 %1213, %v841_v5  }
 0x2d4   :  { %1301 = vrcp.f32 %v694_v6  ;;  %v1296_v3 = vpop.eup %1295 }
 0x2d5   :  { %v828_v13 = vsub.f32 %v1296_v3, %v793_v8  ;;  %v986_v3 = vadd.s32 4294967208, %v1674_v24  ;;  %v982_v8 = vsub.s32 %v979_v59, %v1643_v0 }
 0x2d6   :  { %v1298_v7 = vpop.eup %1297  ;;  %v797_v18 = vpop.permute.xlu0 %796 }
 0x2d7   :  { %v826_v10 = vsub.f32 %v1298_v7, %v785_v1  ;;  %890 = vperm.xlu1 %1213, %v839_v60   ;;  %v844_v16 = vmul.f32 %v828_v13, %v828_v13  ;;  %v968_v1 = vsub.s32 %v965_v55, %v1643_v0  ;;  %v989_v13 = vsub.s32 %v986_v3, %v1643_v0 }
 0x2d9   :  { %v842_v12 = vmul.f32 %v826_v10, %v826_v10 }
 0x2da   :  { %v1300_v15 = vpop.eup %1299 }
 0x2db   :  { %899 = vperm.xlu0 %1214, %v842_v12   ;;  %v829_v21 = vsub.f32 %v1300_v15, %v797_v18 }
 0x2dd   :  { %v845_v22 = vmul.f32 %v829_v21, %v829_v21  ;;  %v1007_v21 = vadd.s32 4294967184, %v1674_v24 }
 0x2de   :  { %v1302_v17 = vpop.eup %1301 }
 0x2df   :  { %v827_v19 = vsub.f32 %v1302_v17, %v789_v11  ;;  %905 = vperm.xlu0 %1214, %v844_v16   ;;  %v993_v11 = vadd.s32 4294967200, %v1674_v24  ;;  %v1000_v16 = vadd.s32 4294967192, %v1674_v24 }
 0x2e1   :  { %v843_v20 = vmul.f32 %v827_v19, %v827_v19  ;;  %v996_v18 = vsub.s32 %v993_v11, %v1643_v0 }
 0x2e3   :  { %902 = vperm.xlu1 %1213, %v843_v20  }
 0x2e7   :  { %908 = vperm.xlu1 %1213, %v845_v22  }
 0x326   :  { %v870_v23 = vpop.permute.xlu1 %869 }
 0x327   :  { %v927_v41 = vrot.slane %v870_v23, %v926_v61  ;;  %v1003_v23 = vsub.s32 %v1000_v16, %v1643_v0 }
 0x32a   :  { %v864_v26 = vpop.permute.xlu1 %863 }
 0x32b   :  { %v867_v25 = vpop.permute.xlu0 %866  ;;  %v915_v32 = vrot.slane %v864_v26, %v914_v27 }
 0x32c   :  { %v920_v33 = vrot.slane %v867_v25, %v919_v28  ;;  %v1030_v25 = vmul.u32 128, %v1643_v0  ;;  %v1010_v28 = vsub.s32 %v1007_v21, %v1643_v0 }
 0x32e   :  { %v873_v34 = vpop.permute.xlu1 %872  ;;  %v922_v38 = vsel %vm921_vm1, %v920_v33, %v915_v32  ;;  %v1033_v32 = vadd.s32 %v1030_v25, %v1674_v24 }
 0x32f   :  { %v934_v44 = vrot.slane %v873_v34, %v933_v35  ;;  %v929_v46 = vsel %vm928_vm2, %v927_v41, %v922_v38 }
 0x330   :  { %vm1034_vm0 = vcmp.lt.s32.totalorder %v1033_v32, 8 }
 0x331   :  { %v936_v51 = vsel %vm935_vm3, %v934_v44, %v929_v46 }
 0x336   :  { %v882_v63 = vpop.permute.xlu0 %881 }
 0x337   :  { %v955_v39 = vrot.slane %v882_v63, %v954_v49 }
 0x33a   :  { %v876_v40 = vpop.permute.xlu0 %875 }
 0x33b   :  { %v941_v47 = vrot.slane %v876_v40, %v940_v37 }
 0x33d   :  { %v943_v54 = vsel %vm942_vm4, %v941_v47, %v936_v51 }
 0x348   :  { %v894_v52 = vpop.permute.xlu0 %893 }
 0x349   :  { %v983_v17 = vrot.slane %v894_v52, %v982_v8 }
 0x34a   :  { %v885_v43 = vpop.permute.xlu1 %884 }
 0x34b   :  { %v962_v4 = vrot.slane %v885_v43, %v961_v56 }
 0x34c   :  { %v888_v5 = vpop.permute.xlu0 %887 }
 0x34d   :  { %v969_v10 = vrot.slane %v888_v5, %v968_v1 }
 0x34e   :  { %v879_v50 = vpop.permute.xlu1 %878 }
 0x34f   :  { %v948_v53 = vrot.slane %v879_v50, %v947_v45 }
 0x351   :  { %v950_v57 = vsel %vm949_vm5, %v948_v53, %v943_v54 }
 0x352   :  { %v897_v14 = vpop.permute.xlu1 %896  ;;  %v957_v62 = vsel %vm956_vm6, %v955_v39, %v950_v57 }
 0x353   :  { %v964_v60 = vsel %vm963_vm7, %v962_v4, %v957_v62  ;;  %v990_v22 = vrot.slane %v897_v14, %v989_v13 }
 0x354   :  { %v971_v12 = vsel %vm970_vm8, %v969_v10, %v964_v60 }
 0x356   :  { %v891_v6 = vpop.permute.xlu1 %890 }
 0x357   :  { %v976_v7 = vrot.slane %v891_v6, %v975_v58 }
 0x359   :  { %v978_v15 = vsel %vm977_vm9, %v976_v7, %v971_v12 }
 0x35a   :  { %v900_v19 = vpop.permute.xlu0 %899  ;;  %v985_v20 = vsel %vm984_vm10, %v983_v17, %v978_v15 }
 0x35b   :  { %v997_v26 = vrot.slane %v900_v19, %v996_v18  ;;  %v992_v27 = vsel %vm991_vm11, %v990_v22, %v985_v20 }
 0x35d   :  { %v999_v33 = vsel %vm998_vm12, %v997_v26, %v992_v27 }
 0x35e   :  { %v906_v30 = vpop.permute.xlu0 %905 }
 0x35f   :  { %v1011_v34 = vrot.slane %v906_v30, %v1010_v28 }
 0x362   :  { %v903_v29 = vpop.permute.xlu1 %902 }
 0x363   :  { %v1004_v63 = vrot.slane %v903_v29, %v1003_v23 }
 0x365   :  { %v1006_v61 = vsel %vm1005_vm13, %v1004_v63, %v999_v33 }
 0x366   :  { %v909_v35 = vpop.permute.xlu1 %908  ;;  %v1013_v37 = vsel %vm1012_vm14, %v1011_v34, %v1006_v61 }
 0x367   :  { %v1018_v36 = vrot.slane %v909_v35, %v1017_v31 }
 0x369   :  { %v1020_v38 = vsel %vm1019_vm15, %v1018_v36, %v1013_v37 }
 0x36a   :  { %1022 = vst [vmem:[#allocation6] sm:$0x1] %v1020_v38  ;;  %v1035_v40 = vsel %vm1034_vm0, %v1020_v38, 0.0 }
 0x36b   :  { %1036 = vst [vmem:[#allocation6] sm:$0x1] %v1035_v40 }
 0x36c   :  { %1336 = shalt.err (!%p1333_p12)
}
 0x36d   :  { %s1337_s13 = scalar_lea.hbm %s1730_s8, 16 }
 0x36e   :  { %p1338_p13 = scmp.ne.s32.totalorder %s1730_s8, %s1337_s13  ;;  %p1341_p0 = scmp.lt.u32.totalorder %s1337_s13, %s1730_s8 }
 0x370   :  { %p1343_p1 = pnand %p1341_p0, %p1338_p13 }
 0x372   :  { %1346 = shalt.err (!%p1343_p1)
}
 0x373   :  { %1046 = dma.vmem_to_hbm [thread:$0]  %s1044_s5, 16, %s1730_s8, [#allocation5]  }
 0x374   :  { %1349 = dma.done.wait [#allocation5], 16  }
 0x375   :  { %1350 = vsyncadd [#allocation5], 4294967280 }
 0x376   :  { %1050 = vsyncpa [#allocation4], 1 }
 0x377   :  { %1051 = vsyncpa [#allocation5], 1 }

</bundles_post_ra>
